<compile_context>
chip_gen: v5e
topology: v5e:2x2
jax: 0.10.0
libtpu: 0.0.40
codegen_flags: <defaults>
</compile_context>

<pallas_src>
import functools

import jax
import jax.numpy as jnp
from jax.experimental import pallas as pl
from jax.experimental.pallas import tpu as pltpu


def _round_up(x, m):
    return ((x + m - 1) // m) * m


def _cdiv(a, b):
    return (a + b - 1) // b


def _yolo_loss_kernel(p_ref, gt_ref, out_ref, *, box_num, class_num,
                      grid_rows, grid_cols, m_lanes, n_valid):
    """Per-tile partial sums over dense (8, L) cell tiles.

    p_ref : (5*box_num + class_num, 8, L) prediction features
    gt_ref: (5 + class_num, 8, L)         ground-truth features
    out_ref (f32[8, L]): row r, lane l = sublane-reduced partial sum of
      [0] class sq-err   [1] xy sq-err    [2] wh sq-err   [3] pos-conf sq-err
      [4] neg-conf sq-err [5] positive-cell count [6] negative-box count
      [7] zero (padding row)
    """
    f32 = jnp.float32
    _, sub, lane_tile = p_ref.shape
    step = pl.program_id(0)

    def pf(i):
        return p_ref[i].astype(f32)

    def gf(i):
        return gt_ref[i].astype(f32)

    # Global cell index of every (sublane, lane) element of this tile.
    sub_i = jax.lax.broadcasted_iota(jnp.int32, (sub, lane_tile), 0)
    lane_i = jax.lax.broadcasted_iota(jnp.int32, (sub, lane_tile), 1)
    lane_g = lane_i + step * lane_tile
    gidx = sub_i * m_lanes + lane_g
    # Mask ragged lanes of the last block and the <=7 zero-padded cells.
    valid = jnp.logical_and(lane_g < m_lanes, gidx < n_valid)

    cols_f = float(grid_cols)
    rows_f = float(grid_rows)
    inv_cols = 1.0 / cols_f
    inv_rows = 1.0 / rows_f

    # Row/col of each cell.  Two true divides per tile (not per box); f32
    # floor-division is exact for n < 2^23 (checked in the wrapper).
    gidx_f = gidx.astype(f32)
    q = jnp.floor(gidx_f / cols_f)
    col = gidx_f - q * cols_f
    row = q - jnp.floor(q / rows_f) * rows_f

    resp = gf(0)
    pos = jnp.logical_and(resp > 0.0, valid)

    # Responsible-box selection: argmax of predicted confidence (matches the
    # torch module's p_conf.max(dim=-1) + scatter; first-max tie-break).
    confs = [pf(5 * b) for b in range(box_num)]
    max_c = confs[0]
    for b in range(1, box_num):
        max_c = jnp.maximum(max_c, confs[b])
    box_sel = []
    taken = jnp.zeros((sub, lane_tile), jnp.bool_)
    for b in range(box_num):
        sel = jnp.logical_and(confs[b] >= max_c, jnp.logical_not(taken))
        taken = jnp.logical_or(taken, sel)
        box_sel.append(sel)

    zeros = jnp.zeros((sub, lane_tile), f32)

    # ---- class loss contribution (positive cells only) ----
    class_sq = zeros
    for c in range(class_num):
        d = pf(5 * box_num + c) - gf(5 + c)
        class_sq = class_sq + d * d
    class_sq = jnp.where(pos, class_sq, 0.0)

    # ---- ground-truth box: global -> cell coordinates (YOLO-v1) ----
    g_x, g_y, g_w, g_h = gf(1), gf(2), gf(3), gf(4)
    cell_gx = g_x * cols_f - col
    cell_gy = g_y * rows_f - row
    cell_gw = jnp.sqrt(jnp.maximum(g_w, 0.0))
    cell_gh = jnp.sqrt(jnp.maximum(g_h, 0.0))

    xy_sq = zeros
    wh_sq = zeros
    pos_conf_sq = zeros
    neg_conf_sq = zeros
    neg_cnt = zeros
    for b in range(box_num):
        m_box = jnp.logical_and(pos, box_sel[b])            # responsible box
        n_box = jnp.logical_and(valid, jnp.logical_not(m_box))
        p_c = confs[b]
        p_x = pf(5 * b + 1)
        p_y = pf(5 * b + 2)
        p_w = pf(5 * b + 3)
        p_h = pf(5 * b + 4)

        dx = p_x - cell_gx
        dy = p_y - cell_gy
        xy_sq = xy_sq + jnp.where(m_box, dx * dx + dy * dy, 0.0)
        dw = p_w - cell_gw
        dh = p_h - cell_gh
        wh_sq = wh_sq + jnp.where(m_box, dw * dw + dh * dh, 0.0)

        # predicted box: cell -> global coordinates, IoU with global gt box.
        pg_x = (p_x + col) * inv_cols
        pg_y = (p_y + row) * inv_rows
        pg_w = p_w * p_w
        pg_h = p_h * p_h
        iw = jnp.maximum(
            jnp.minimum(pg_x + 0.5 * pg_w, g_x + 0.5 * g_w)
            - jnp.maximum(pg_x - 0.5 * pg_w, g_x - 0.5 * g_w), 0.0)
        ih = jnp.maximum(
            jnp.minimum(pg_y + 0.5 * pg_h, g_y + 0.5 * g_h)
            - jnp.maximum(pg_y - 0.5 * pg_h, g_y - 0.5 * g_h), 0.0)
        inter = iw * ih
        union = pg_w * pg_h + g_w * g_h - inter
        iou = inter * pl.reciprocal(jnp.maximum(union, 1e-10), approx=True)

        dcf = p_c - iou
        pos_conf_sq = pos_conf_sq + jnp.where(m_box, dcf * dcf, 0.0)
        neg_conf_sq = neg_conf_sq + jnp.where(n_box, p_c * p_c, 0.0)
        neg_cnt = neg_cnt + n_box.astype(f32)

    pos_cnt = pos.astype(f32)

    # Sublane-reduce each quantity (XLU is otherwise idle), assemble the
    # 8 rows and emit a single dense (8, L) store.
    reduced = [jnp.sum(r, axis=0, keepdims=True)
               for r in (class_sq, xy_sq, wh_sq, pos_conf_sq, neg_conf_sq,
                         pos_cnt, neg_cnt)]
    reduced.append(jnp.zeros((1, lane_tile), f32))
    out_ref[...] = jnp.concatenate(reduced, axis=0)


def yolo_loss(p, gt, *, grid_size, box_num, class_num):
    """Returns (loss, class_loss, xy_loss, wh_loss, pos_conf_loss, neg_conf_loss)."""
    rows, cols = grid_size
    batch = p.shape[0]
    n = batch * rows * cols
    fp = 5 * box_num + class_num
    fg = 5 + class_num
    assert n < (1 << 23), "in-kernel f32 index math requires n < 2^23 cells"

    SUB = 8
    n8 = _round_up(n, SUB)
    m = n8 // SUB

    # Feature-major views, repacked so the cell axis spans (8 sublanes, m lanes).
    p_t = p.reshape(n, fp).T
    gt_t = gt.reshape(n, fg).T
    if n8 != n:
        p_t = jnp.pad(p_t, ((0, 0), (0, n8 - n)))
        gt_t = jnp.pad(gt_t, ((0, 0), (0, n8 - n)))
    p_t = p_t.reshape(fp, SUB, m)
    gt_t = gt_t.reshape(fg, SUB, m)

    # Lane tile: whole problem in one grid step when it fits (<= 2048 cells),
    # otherwise 256-lane (2048-cell) steps; the ragged last block is handled
    # by the in-kernel validity mask (no padding to a tile multiple).
    lane_tile = m if m <= 256 else 256
    num_blocks = _cdiv(m, lane_tile)

    kernel = functools.partial(
        _yolo_loss_kernel, box_num=box_num, class_num=class_num,
        grid_rows=rows, grid_cols=cols, m_lanes=m, n_valid=n)

    partials = pl.pallas_call(
        kernel,
        out_shape=jax.ShapeDtypeStruct((8, m), jnp.float32),
        grid=(num_blocks,),
        in_specs=[pl.BlockSpec((fp, SUB, lane_tile), lambda i: (0, 0, i)),
                  pl.BlockSpec((fg, SUB, lane_tile), lambda i: (0, 0, i))],
        out_specs=pl.BlockSpec((8, lane_tile), lambda i: (0, i)),
        compiler_params=pltpu.CompilerParams(
            dimension_semantics=("parallel",)),
    )(p_t, gt_t)

    sums = jnp.sum(partials, axis=1)         # tiny final reduction in XLA
    class_sq, xy_sq, wh_sq = sums[0], sums[1], sums[2]
    pos_conf_sq, neg_conf_sq = sums[3], sums[4]
    pos_cnt, neg_cnt = sums[5], sums[6]

    # F.mse_loss default reduction='mean' over the masked selections.
    # Guard empty positive/negative sets (torch would return NaN there).
    pos_den = jnp.maximum(pos_cnt, 1.0)
    neg_den = jnp.maximum(neg_cnt, 1.0)
    class_loss = class_sq / (pos_den * class_num)
    xy_loss = xy_sq / (pos_den * 2.0)
    wh_loss = wh_sq / (pos_den * 2.0)
    pos_conf_loss = pos_conf_sq / pos_den
    neg_conf_loss = neg_conf_sq / neg_den
    loss = (class_loss + 2.0 * pos_conf_loss + 0.5 * neg_conf_loss
            + 5.0 * xy_loss + 5.0 * wh_loss)
    return loss, class_loss, xy_loss, wh_loss, pos_conf_loss, neg_conf_loss


if __name__ == "__main__":
    grid_size = (8, 8)
    box_num = 2
    class_num = 4
    batch = 2
    rows, cols = grid_size

    key = jax.random.PRNGKey(0)
    k_p, k_resp, k_box, k_cls = jax.random.split(key, 4)

    # predictions: (B, R, C, 5*box_num + class_num)
    p = jax.random.normal(
        k_p, (batch, rows, cols, 5 * box_num + class_num), dtype=jnp.float32)

    # ground truth: (B, R, C, 5 + class_num) = [response, x, y, w, h, one-hot]
    gt_resp = (jax.random.uniform(k_resp, (batch, rows, cols)) > 0.7
               ).astype(jnp.float32)
    gt_xy = jax.random.uniform(k_box, (batch, rows, cols, 2),
                               minval=0.0, maxval=1.0, dtype=jnp.float32)
    gt_wh = jax.random.uniform(jax.random.fold_in(k_box, 1),
                               (batch, rows, cols, 2),
                               minval=0.05, maxval=0.5, dtype=jnp.float32)
    gt_cls_idx = jax.random.randint(k_cls, (batch, rows, cols), 0, class_num)
    gt_class = jax.nn.one_hot(gt_cls_idx, class_num, dtype=jnp.float32)
    gt = jnp.concatenate([gt_resp[..., None], gt_xy, gt_wh, gt_class], axis=-1)

    out = yolo_loss(p, gt, grid_size=grid_size, box_num=box_num,
                    class_num=class_num)
    out = jax.block_until_ready(out)
    print("KERNEL_OK")
</pallas_src>

<mosaic_0001>
module attributes {stable_mosaic.version = 11 : i64} {
  func.func @_yolo_loss_kernel(%arg0: i32, %arg1: memref<14x8x16xf32, #tpu.memory_space<vmem>>, %arg2: memref<9x8x16xf32, #tpu.memory_space<vmem>>, %arg3: memref<8x16xf32, #tpu.memory_space<vmem>>) attributes {dimension_semantics = [#tpu.dimension_semantics<parallel>], iteration_bounds = array<i64: 1>, scalar_prefetch = 0 : i64, scratch_operands = 0 : i64, tpu.core_type = #tpu.core_type<tc>, window_params = [{transform_indices = @transform_0, window_bounds = array<i64: 14, 8, 16>}, {transform_indices = @transform_1, window_bounds = array<i64: 9, 8, 16>}, {transform_indices = @transform_2, window_bounds = array<i64: 8, 16>}]} {
    %0 = tpu.iota {dimensions = array<i32: 0>} : vector<8x16xi32>
    %1 = tpu.iota {dimensions = array<i32: 1>} : vector<8x16xi32>
    %c16_i32 = arith.constant 16 : i32
    %2 = arith.muli %arg0, %c16_i32 : i32
    %3 = vector.broadcast %2 : i32 to vector<8x16xi32>
    %4 = arith.addi %1, %3 : vector<8x16xi32>
    %c16_i32_0 = arith.constant 16 : i32
    %5 = vector.broadcast %c16_i32_0 : i32 to vector<8x16xi32>
    %6 = arith.muli %0, %5 : vector<8x16xi32>
    %7 = arith.addi %6, %4 : vector<8x16xi32>
    %c16_i32_1 = arith.constant 16 : i32
    %8 = vector.broadcast %c16_i32_1 : i32 to vector<8x16xi32>
    %9 = arith.cmpi slt, %4, %8 : vector<8x16xi32>
    %c128_i32 = arith.constant 128 : i32
    %10 = vector.broadcast %c128_i32 : i32 to vector<8x16xi32>
    %11 = arith.cmpi slt, %7, %10 : vector<8x16xi32>
    %12 = arith.andi %9, %11 : vector<8x16xi1>
    %13 = arith.sitofp %7 : vector<8x16xi32> to vector<8x16xf32>
    %cst = arith.constant 8.000000e+00 : f32
    %14 = vector.broadcast %cst : f32 to vector<8x16xf32>
    %15 = arith.divf %13, %14 : vector<8x16xf32>
    %16 = math.floor %15 : vector<8x16xf32>
    %cst_2 = arith.constant 8.000000e+00 : f32
    %17 = vector.broadcast %cst_2 : f32 to vector<8x16xf32>
    %18 = arith.mulf %16, %17 : vector<8x16xf32>
    %19 = arith.subf %13, %18 : vector<8x16xf32>
    %cst_3 = arith.constant 8.000000e+00 : f32
    %20 = vector.broadcast %cst_3 : f32 to vector<8x16xf32>
    %21 = arith.divf %16, %20 : vector<8x16xf32>
    %22 = math.floor %21 : vector<8x16xf32>
    %cst_4 = arith.constant 8.000000e+00 : f32
    %23 = vector.broadcast %cst_4 : f32 to vector<8x16xf32>
    %24 = arith.mulf %22, %23 : vector<8x16xf32>
    %25 = arith.subf %16, %24 : vector<8x16xf32>
    %c0 = arith.constant 0 : index
    %c0_5 = arith.constant 0 : index
    %c0_6 = arith.constant 0 : index
    %26 = vector.load %arg2[%c0, %c0_5, %c0_6] : memref<9x8x16xf32, #tpu.memory_space<vmem>>, vector<1x8x16xf32>
    %27 = vector.shape_cast %26 : vector<1x8x16xf32> to vector<8x16xf32>
    %cst_7 = arith.constant 0.000000e+00 : f32
    %28 = vector.broadcast %cst_7 : f32 to vector<8x16xf32>
    %29 = arith.cmpf ogt, %27, %28 : vector<8x16xf32>
    %30 = arith.andi %29, %12 : vector<8x16xi1>
    %c0_8 = arith.constant 0 : index
    %c0_9 = arith.constant 0 : index
    %c0_10 = arith.constant 0 : index
    %31 = vector.load %arg1[%c0_8, %c0_9, %c0_10] : memref<14x8x16xf32, #tpu.memory_space<vmem>>, vector<1x8x16xf32>
    %32 = vector.shape_cast %31 : vector<1x8x16xf32> to vector<8x16xf32>
    %c5 = arith.constant 5 : index
    %c0_11 = arith.constant 0 : index
    %c0_12 = arith.constant 0 : index
    %33 = vector.load %arg1[%c5, %c0_11, %c0_12] : memref<14x8x16xf32, #tpu.memory_space<vmem>>, vector<1x8x16xf32>
    %34 = vector.shape_cast %33 : vector<1x8x16xf32> to vector<8x16xf32>
    %35 = arith.maximumf %32, %34 : vector<8x16xf32>
    %false = arith.constant false
    %36 = vector.broadcast %false : i1 to vector<8x16xi1>
    %37 = arith.cmpf oge, %32, %35 : vector<8x16xf32>
    %cst_13 = arith.constant dense<true> : vector<8x16xi1>
    %38 = arith.xori %36, %cst_13 : vector<8x16xi1>
    %39 = arith.andi %37, %38 : vector<8x16xi1>
    %40 = arith.ori %36, %39 : vector<8x16xi1>
    %41 = arith.cmpf oge, %34, %35 : vector<8x16xf32>
    %cst_14 = arith.constant dense<true> : vector<8x16xi1>
    %42 = arith.xori %40, %cst_14 : vector<8x16xi1>
    %43 = arith.andi %41, %42 : vector<8x16xi1>
    %cst_15 = arith.constant 0.000000e+00 : f32
    %44 = vector.broadcast %cst_15 : f32 to vector<8x16xf32>
    %c10 = arith.constant 10 : index
    %c0_16 = arith.constant 0 : index
    %c0_17 = arith.constant 0 : index
    %45 = vector.load %arg1[%c10, %c0_16, %c0_17] : memref<14x8x16xf32, #tpu.memory_space<vmem>>, vector<1x8x16xf32>
    %46 = vector.shape_cast %45 : vector<1x8x16xf32> to vector<8x16xf32>
    %c5_18 = arith.constant 5 : index
    %c0_19 = arith.constant 0 : index
    %c0_20 = arith.constant 0 : index
    %47 = vector.load %arg2[%c5_18, %c0_19, %c0_20] : memref<9x8x16xf32, #tpu.memory_space<vmem>>, vector<1x8x16xf32>
    %48 = vector.shape_cast %47 : vector<1x8x16xf32> to vector<8x16xf32>
    %49 = arith.subf %46, %48 : vector<8x16xf32>
    %50 = arith.mulf %49, %49 : vector<8x16xf32>
    %51 = arith.addf %44, %50 : vector<8x16xf32>
    %c11 = arith.constant 11 : index
    %c0_21 = arith.constant 0 : index
    %c0_22 = arith.constant 0 : index
    %52 = vector.load %arg1[%c11, %c0_21, %c0_22] : memref<14x8x16xf32, #tpu.memory_space<vmem>>, vector<1x8x16xf32>
    %53 = vector.shape_cast %52 : vector<1x8x16xf32> to vector<8x16xf32>
    %c6 = arith.constant 6 : index
    %c0_23 = arith.constant 0 : index
    %c0_24 = arith.constant 0 : index
    %54 = vector.load %arg2[%c6, %c0_23, %c0_24] : memref<9x8x16xf32, #tpu.memory_space<vmem>>, vector<1x8x16xf32>
    %55 = vector.shape_cast %54 : vector<1x8x16xf32> to vector<8x16xf32>
    %56 = arith.subf %53, %55 : vector<8x16xf32>
    %57 = arith.mulf %56, %56 : vector<8x16xf32>
    %58 = arith.addf %51, %57 : vector<8x16xf32>
    %c12 = arith.constant 12 : index
    %c0_25 = arith.constant 0 : index
    %c0_26 = arith.constant 0 : index
    %59 = vector.load %arg1[%c12, %c0_25, %c0_26] : memref<14x8x16xf32, #tpu.memory_space<vmem>>, vector<1x8x16xf32>
    %60 = vector.shape_cast %59 : vector<1x8x16xf32> to vector<8x16xf32>
    %c7 = arith.constant 7 : index
    %c0_27 = arith.constant 0 : index
    %c0_28 = arith.constant 0 : index
    %61 = vector.load %arg2[%c7, %c0_27, %c0_28] : memref<9x8x16xf32, #tpu.memory_space<vmem>>, vector<1x8x16xf32>
    %62 = vector.shape_cast %61 : vector<1x8x16xf32> to vector<8x16xf32>
    %63 = arith.subf %60, %62 : vector<8x16xf32>
    %64 = arith.mulf %63, %63 : vector<8x16xf32>
    %65 = arith.addf %58, %64 : vector<8x16xf32>
    %c13 = arith.constant 13 : index
    %c0_29 = arith.constant 0 : index
    %c0_30 = arith.constant 0 : index
    %66 = vector.load %arg1[%c13, %c0_29, %c0_30] : memref<14x8x16xf32, #tpu.memory_space<vmem>>, vector<1x8x16xf32>
    %67 = vector.shape_cast %66 : vector<1x8x16xf32> to vector<8x16xf32>
    %c8 = arith.constant 8 : index
    %c0_31 = arith.constant 0 : index
    %c0_32 = arith.constant 0 : index
    %68 = vector.load %arg2[%c8, %c0_31, %c0_32] : memref<9x8x16xf32, #tpu.memory_space<vmem>>, vector<1x8x16xf32>
    %69 = vector.shape_cast %68 : vector<1x8x16xf32> to vector<8x16xf32>
    %70 = arith.subf %67, %69 : vector<8x16xf32>
    %71 = arith.mulf %70, %70 : vector<8x16xf32>
    %72 = arith.addf %65, %71 : vector<8x16xf32>
    %cst_33 = arith.constant 0.000000e+00 : f32
    %73 = vector.broadcast %cst_33 : f32 to vector<8x16xf32>
    %74 = arith.select %30, %72, %73 : vector<8x16xi1>, vector<8x16xf32>
    %c1 = arith.constant 1 : index
    %c0_34 = arith.constant 0 : index
    %c0_35 = arith.constant 0 : index
    %75 = vector.load %arg2[%c1, %c0_34, %c0_35] : memref<9x8x16xf32, #tpu.memory_space<vmem>>, vector<1x8x16xf32>
    %76 = vector.shape_cast %75 : vector<1x8x16xf32> to vector<8x16xf32>
    %c2 = arith.constant 2 : index
    %c0_36 = arith.constant 0 : index
    %c0_37 = arith.constant 0 : index
    %77 = vector.load %arg2[%c2, %c0_36, %c0_37] : memref<9x8x16xf32, #tpu.memory_space<vmem>>, vector<1x8x16xf32>
    %78 = vector.shape_cast %77 : vector<1x8x16xf32> to vector<8x16xf32>
    %c3 = arith.constant 3 : index
    %c0_38 = arith.constant 0 : index
    %c0_39 = arith.constant 0 : index
    %79 = vector.load %arg2[%c3, %c0_38, %c0_39] : memref<9x8x16xf32, #tpu.memory_space<vmem>>, vector<1x8x16xf32>
    %80 = vector.shape_cast %79 : vector<1x8x16xf32> to vector<8x16xf32>
    %c4 = arith.constant 4 : index
    %c0_40 = arith.constant 0 : index
    %c0_41 = arith.constant 0 : index
    %81 = vector.load %arg2[%c4, %c0_40, %c0_41] : memref<9x8x16xf32, #tpu.memory_space<vmem>>, vector<1x8x16xf32>
    %82 = vector.shape_cast %81 : vector<1x8x16xf32> to vector<8x16xf32>
    %cst_42 = arith.constant 8.000000e+00 : f32
    %83 = vector.broadcast %cst_42 : f32 to vector<8x16xf32>
    %84 = arith.mulf %76, %83 : vector<8x16xf32>
    %85 = arith.subf %84, %19 : vector<8x16xf32>
    %cst_43 = arith.constant 8.000000e+00 : f32
    %86 = vector.broadcast %cst_43 : f32 to vector<8x16xf32>
    %87 = arith.mulf %78, %86 : vector<8x16xf32>
    %88 = arith.subf %87, %25 : vector<8x16xf32>
    %cst_44 = arith.constant 0.000000e+00 : f32
    %89 = vector.broadcast %cst_44 : f32 to vector<8x16xf32>
    %90 = arith.maximumf %80, %89 : vector<8x16xf32>
    %91 = math.sqrt %90 : vector<8x16xf32>
    %cst_45 = arith.constant 0.000000e+00 : f32
    %92 = vector.broadcast %cst_45 : f32 to vector<8x16xf32>
    %93 = arith.maximumf %82, %92 : vector<8x16xf32>
    %94 = math.sqrt %93 : vector<8x16xf32>
    %95 = arith.andi %30, %39 : vector<8x16xi1>
    %cst_46 = arith.constant dense<true> : vector<8x16xi1>
    %96 = arith.xori %95, %cst_46 : vector<8x16xi1>
    %97 = arith.andi %12, %96 : vector<8x16xi1>
    %c1_47 = arith.constant 1 : index
    %c0_48 = arith.constant 0 : index
    %c0_49 = arith.constant 0 : index
    %98 = vector.load %arg1[%c1_47, %c0_48, %c0_49] : memref<14x8x16xf32, #tpu.memory_space<vmem>>, vector<1x8x16xf32>
    %99 = vector.shape_cast %98 : vector<1x8x16xf32> to vector<8x16xf32>
    %c2_50 = arith.constant 2 : index
    %c0_51 = arith.constant 0 : index
    %c0_52 = arith.constant 0 : index
    %100 = vector.load %arg1[%c2_50, %c0_51, %c0_52] : memref<14x8x16xf32, #tpu.memory_space<vmem>>, vector<1x8x16xf32>
    %101 = vector.shape_cast %100 : vector<1x8x16xf32> to vector<8x16xf32>
    %c3_53 = arith.constant 3 : index
    %c0_54 = arith.constant 0 : index
    %c0_55 = arith.constant 0 : index
    %102 = vector.load %arg1[%c3_53, %c0_54, %c0_55] : memref<14x8x16xf32, #tpu.memory_space<vmem>>, vector<1x8x16xf32>
    %103 = vector.shape_cast %102 : vector<1x8x16xf32> to vector<8x16xf32>
    %c4_56 = arith.constant 4 : index
    %c0_57 = arith.constant 0 : index
    %c0_58 = arith.constant 0 : index
    %104 = vector.load %arg1[%c4_56, %c0_57, %c0_58] : memref<14x8x16xf32, #tpu.memory_space<vmem>>, vector<1x8x16xf32>
    %105 = vector.shape_cast %104 : vector<1x8x16xf32> to vector<8x16xf32>
    %106 = arith.subf %99, %85 : vector<8x16xf32>
    %107 = arith.subf %101, %88 : vector<8x16xf32>
    %108 = arith.mulf %106, %106 : vector<8x16xf32>
    %109 = arith.mulf %107, %107 : vector<8x16xf32>
    %110 = arith.addf %108, %109 : vector<8x16xf32>
    %cst_59 = arith.constant 0.000000e+00 : f32
    %111 = vector.broadcast %cst_59 : f32 to vector<8x16xf32>
    %112 = arith.select %95, %110, %111 : vector<8x16xi1>, vector<8x16xf32>
    %113 = arith.addf %44, %112 : vector<8x16xf32>
    %114 = arith.subf %103, %91 : vector<8x16xf32>
    %115 = arith.subf %105, %94 : vector<8x16xf32>
    %116 = arith.mulf %114, %114 : vector<8x16xf32>
    %117 = arith.mulf %115, %115 : vector<8x16xf32>
    %118 = arith.addf %116, %117 : vector<8x16xf32>
    %cst_60 = arith.constant 0.000000e+00 : f32
    %119 = vector.broadcast %cst_60 : f32 to vector<8x16xf32>
    %120 = arith.select %95, %118, %119 : vector<8x16xi1>, vector<8x16xf32>
    %121 = arith.addf %44, %120 : vector<8x16xf32>
    %122 = arith.addf %99, %19 : vector<8x16xf32>
    %cst_61 = arith.constant 1.250000e-01 : f32
    %123 = vector.broadcast %cst_61 : f32 to vector<8x16xf32>
    %124 = arith.mulf %122, %123 : vector<8x16xf32>
    %125 = arith.addf %101, %25 : vector<8x16xf32>
    %cst_62 = arith.constant 1.250000e-01 : f32
    %126 = vector.broadcast %cst_62 : f32 to vector<8x16xf32>
    %127 = arith.mulf %125, %126 : vector<8x16xf32>
    %128 = arith.mulf %103, %103 : vector<8x16xf32>
    %129 = arith.mulf %105, %105 : vector<8x16xf32>
    %cst_63 = arith.constant 5.000000e-01 : f32
    %130 = vector.broadcast %cst_63 : f32 to vector<8x16xf32>
    %131 = arith.mulf %130, %128 : vector<8x16xf32>
    %132 = arith.addf %124, %131 : vector<8x16xf32>
    %cst_64 = arith.constant 5.000000e-01 : f32
    %133 = vector.broadcast %cst_64 : f32 to vector<8x16xf32>
    %134 = arith.mulf %133, %80 : vector<8x16xf32>
    %135 = arith.addf %76, %134 : vector<8x16xf32>
    %136 = arith.minimumf %132, %135 : vector<8x16xf32>
    %cst_65 = arith.constant 5.000000e-01 : f32
    %137 = vector.broadcast %cst_65 : f32 to vector<8x16xf32>
    %138 = arith.mulf %137, %128 : vector<8x16xf32>
    %139 = arith.subf %124, %138 : vector<8x16xf32>
    %cst_66 = arith.constant 5.000000e-01 : f32
    %140 = vector.broadcast %cst_66 : f32 to vector<8x16xf32>
    %141 = arith.mulf %140, %80 : vector<8x16xf32>
    %142 = arith.subf %76, %141 : vector<8x16xf32>
    %143 = arith.maximumf %139, %142 : vector<8x16xf32>
    %144 = arith.subf %136, %143 : vector<8x16xf32>
    %cst_67 = arith.constant 0.000000e+00 : f32
    %145 = vector.broadcast %cst_67 : f32 to vector<8x16xf32>
    %146 = arith.maximumf %144, %145 : vector<8x16xf32>
    %cst_68 = arith.constant 5.000000e-01 : f32
    %147 = vector.broadcast %cst_68 : f32 to vector<8x16xf32>
    %148 = arith.mulf %147, %129 : vector<8x16xf32>
    %149 = arith.addf %127, %148 : vector<8x16xf32>
    %cst_69 = arith.constant 5.000000e-01 : f32
    %150 = vector.broadcast %cst_69 : f32 to vector<8x16xf32>
    %151 = arith.mulf %150, %82 : vector<8x16xf32>
    %152 = arith.addf %78, %151 : vector<8x16xf32>
    %153 = arith.minimumf %149, %152 : vector<8x16xf32>
    %cst_70 = arith.constant 5.000000e-01 : f32
    %154 = vector.broadcast %cst_70 : f32 to vector<8x16xf32>
    %155 = arith.mulf %154, %129 : vector<8x16xf32>
    %156 = arith.subf %127, %155 : vector<8x16xf32>
    %cst_71 = arith.constant 5.000000e-01 : f32
    %157 = vector.broadcast %cst_71 : f32 to vector<8x16xf32>
    %158 = arith.mulf %157, %82 : vector<8x16xf32>
    %159 = arith.subf %78, %158 : vector<8x16xf32>
    %160 = arith.maximumf %156, %159 : vector<8x16xf32>
    %161 = arith.subf %153, %160 : vector<8x16xf32>
    %cst_72 = arith.constant 0.000000e+00 : f32
    %162 = vector.broadcast %cst_72 : f32 to vector<8x16xf32>
    %163 = arith.maximumf %161, %162 : vector<8x16xf32>
    %164 = arith.mulf %146, %163 : vector<8x16xf32>
    %165 = arith.mulf %128, %129 : vector<8x16xf32>
    %166 = arith.mulf %80, %82 : vector<8x16xf32>
    %167 = arith.addf %165, %166 : vector<8x16xf32>
    %168 = arith.subf %167, %164 : vector<8x16xf32>
    %cst_73 = arith.constant 1.000000e-10 : f32
    %169 = vector.broadcast %cst_73 : f32 to vector<8x16xf32>
    %170 = arith.maximumf %168, %169 : vector<8x16xf32>
    %171 = tpu.reciprocal %170 {approx = true} : vector<8x16xf32> -> vector<8x16xf32>
    %172 = arith.mulf %164, %171 : vector<8x16xf32>
    %173 = arith.subf %32, %172 : vector<8x16xf32>
    %174 = arith.mulf %173, %173 : vector<8x16xf32>
    %cst_74 = arith.constant 0.000000e+00 : f32
    %175 = vector.broadcast %cst_74 : f32 to vector<8x16xf32>
    %176 = arith.select %95, %174, %175 : vector<8x16xi1>, vector<8x16xf32>
    %177 = arith.addf %44, %176 : vector<8x16xf32>
    %178 = arith.mulf %32, %32 : vector<8x16xf32>
    %cst_75 = arith.constant 0.000000e+00 : f32
    %179 = vector.broadcast %cst_75 : f32 to vector<8x16xf32>
    %180 = arith.select %97, %178, %179 : vector<8x16xi1>, vector<8x16xf32>
    %181 = arith.addf %44, %180 : vector<8x16xf32>
    %182 = arith.extui %97 : vector<8x16xi1> to vector<8x16xi32>
    %183 = arith.sitofp %182 : vector<8x16xi32> to vector<8x16xf32>
    %184 = arith.addf %44, %183 : vector<8x16xf32>
    %185 = arith.andi %30, %43 : vector<8x16xi1>
    %cst_76 = arith.constant dense<true> : vector<8x16xi1>
    %186 = arith.xori %185, %cst_76 : vector<8x16xi1>
    %187 = arith.andi %12, %186 : vector<8x16xi1>
    %c6_77 = arith.constant 6 : index
    %c0_78 = arith.constant 0 : index
    %c0_79 = arith.constant 0 : index
    %188 = vector.load %arg1[%c6_77, %c0_78, %c0_79] : memref<14x8x16xf32, #tpu.memory_space<vmem>>, vector<1x8x16xf32>
    %189 = vector.shape_cast %188 : vector<1x8x16xf32> to vector<8x16xf32>
    %c7_80 = arith.constant 7 : index
    %c0_81 = arith.constant 0 : index
    %c0_82 = arith.constant 0 : index
    %190 = vector.load %arg1[%c7_80, %c0_81, %c0_82] : memref<14x8x16xf32, #tpu.memory_space<vmem>>, vector<1x8x16xf32>
    %191 = vector.shape_cast %190 : vector<1x8x16xf32> to vector<8x16xf32>
    %c8_83 = arith.constant 8 : index
    %c0_84 = arith.constant 0 : index
    %c0_85 = arith.constant 0 : index
    %192 = vector.load %arg1[%c8_83, %c0_84, %c0_85] : memref<14x8x16xf32, #tpu.memory_space<vmem>>, vector<1x8x16xf32>
    %193 = vector.shape_cast %192 : vector<1x8x16xf32> to vector<8x16xf32>
    %c9 = arith.constant 9 : index
    %c0_86 = arith.constant 0 : index
    %c0_87 = arith.constant 0 : index
    %194 = vector.load %arg1[%c9, %c0_86, %c0_87] : memref<14x8x16xf32, #tpu.memory_space<vmem>>, vector<1x8x16xf32>
    %195 = vector.shape_cast %194 : vector<1x8x16xf32> to vector<8x16xf32>
    %196 = arith.subf %189, %85 : vector<8x16xf32>
    %197 = arith.subf %191, %88 : vector<8x16xf32>
    %198 = arith.mulf %196, %196 : vector<8x16xf32>
    %199 = arith.mulf %197, %197 : vector<8x16xf32>
    %200 = arith.addf %198, %199 : vector<8x16xf32>
    %cst_88 = arith.constant 0.000000e+00 : f32
    %201 = vector.broadcast %cst_88 : f32 to vector<8x16xf32>
    %202 = arith.select %185, %200, %201 : vector<8x16xi1>, vector<8x16xf32>
    %203 = arith.addf %113, %202 : vector<8x16xf32>
    %204 = arith.subf %193, %91 : vector<8x16xf32>
    %205 = arith.subf %195, %94 : vector<8x16xf32>
    %206 = arith.mulf %204, %204 : vector<8x16xf32>
    %207 = arith.mulf %205, %205 : vector<8x16xf32>
    %208 = arith.addf %206, %207 : vector<8x16xf32>
    %cst_89 = arith.constant 0.000000e+00 : f32
    %209 = vector.broadcast %cst_89 : f32 to vector<8x16xf32>
    %210 = arith.select %185, %208, %209 : vector<8x16xi1>, vector<8x16xf32>
    %211 = arith.addf %121, %210 : vector<8x16xf32>
    %212 = arith.addf %189, %19 : vector<8x16xf32>
    %cst_90 = arith.constant 1.250000e-01 : f32
    %213 = vector.broadcast %cst_90 : f32 to vector<8x16xf32>
    %214 = arith.mulf %212, %213 : vector<8x16xf32>
    %215 = arith.addf %191, %25 : vector<8x16xf32>
    %cst_91 = arith.constant 1.250000e-01 : f32
    %216 = vector.broadcast %cst_91 : f32 to vector<8x16xf32>
    %217 = arith.mulf %215, %216 : vector<8x16xf32>
    %218 = arith.mulf %193, %193 : vector<8x16xf32>
    %219 = arith.mulf %195, %195 : vector<8x16xf32>
    %cst_92 = arith.constant 5.000000e-01 : f32
    %220 = vector.broadcast %cst_92 : f32 to vector<8x16xf32>
    %221 = arith.mulf %220, %218 : vector<8x16xf32>
    %222 = arith.addf %214, %221 : vector<8x16xf32>
    %cst_93 = arith.constant 5.000000e-01 : f32
    %223 = vector.broadcast %cst_93 : f32 to vector<8x16xf32>
    %224 = arith.mulf %223, %80 : vector<8x16xf32>
    %225 = arith.addf %76, %224 : vector<8x16xf32>
    %226 = arith.minimumf %222, %225 : vector<8x16xf32>
    %cst_94 = arith.constant 5.000000e-01 : f32
    %227 = vector.broadcast %cst_94 : f32 to vector<8x16xf32>
    %228 = arith.mulf %227, %218 : vector<8x16xf32>
    %229 = arith.subf %214, %228 : vector<8x16xf32>
    %cst_95 = arith.constant 5.000000e-01 : f32
    %230 = vector.broadcast %cst_95 : f32 to vector<8x16xf32>
    %231 = arith.mulf %230, %80 : vector<8x16xf32>
    %232 = arith.subf %76, %231 : vector<8x16xf32>
    %233 = arith.maximumf %229, %232 : vector<8x16xf32>
    %234 = arith.subf %226, %233 : vector<8x16xf32>
    %cst_96 = arith.constant 0.000000e+00 : f32
    %235 = vector.broadcast %cst_96 : f32 to vector<8x16xf32>
    %236 = arith.maximumf %234, %235 : vector<8x16xf32>
    %cst_97 = arith.constant 5.000000e-01 : f32
    %237 = vector.broadcast %cst_97 : f32 to vector<8x16xf32>
    %238 = arith.mulf %237, %219 : vector<8x16xf32>
    %239 = arith.addf %217, %238 : vector<8x16xf32>
    %cst_98 = arith.constant 5.000000e-01 : f32
    %240 = vector.broadcast %cst_98 : f32 to vector<8x16xf32>
    %241 = arith.mulf %240, %82 : vector<8x16xf32>
    %242 = arith.addf %78, %241 : vector<8x16xf32>
    %243 = arith.minimumf %239, %242 : vector<8x16xf32>
    %cst_99 = arith.constant 5.000000e-01 : f32
    %244 = vector.broadcast %cst_99 : f32 to vector<8x16xf32>
    %245 = arith.mulf %244, %219 : vector<8x16xf32>
    %246 = arith.subf %217, %245 : vector<8x16xf32>
    %cst_100 = arith.constant 5.000000e-01 : f32
    %247 = vector.broadcast %cst_100 : f32 to vector<8x16xf32>
    %248 = arith.mulf %247, %82 : vector<8x16xf32>
    %249 = arith.subf %78, %248 : vector<8x16xf32>
    %250 = arith.maximumf %246, %249 : vector<8x16xf32>
    %251 = arith.subf %243, %250 : vector<8x16xf32>
    %cst_101 = arith.constant 0.000000e+00 : f32
    %252 = vector.broadcast %cst_101 : f32 to vector<8x16xf32>
    %253 = arith.maximumf %251, %252 : vector<8x16xf32>
    %254 = arith.mulf %236, %253 : vector<8x16xf32>
    %255 = arith.mulf %218, %219 : vector<8x16xf32>
    %256 = arith.mulf %80, %82 : vector<8x16xf32>
    %257 = arith.addf %255, %256 : vector<8x16xf32>
    %258 = arith.subf %257, %254 : vector<8x16xf32>
    %cst_102 = arith.constant 1.000000e-10 : f32
    %259 = vector.broadcast %cst_102 : f32 to vector<8x16xf32>
    %260 = arith.maximumf %258, %259 : vector<8x16xf32>
    %261 = tpu.reciprocal %260 {approx = true} : vector<8x16xf32> -> vector<8x16xf32>
    %262 = arith.mulf %254, %261 : vector<8x16xf32>
    %263 = arith.subf %34, %262 : vector<8x16xf32>
    %264 = arith.mulf %263, %263 : vector<8x16xf32>
    %cst_103 = arith.constant 0.000000e+00 : f32
    %265 = vector.broadcast %cst_103 : f32 to vector<8x16xf32>
    %266 = arith.select %185, %264, %265 : vector<8x16xi1>, vector<8x16xf32>
    %267 = arith.addf %177, %266 : vector<8x16xf32>
    %268 = arith.mulf %34, %34 : vector<8x16xf32>
    %cst_104 = arith.constant 0.000000e+00 : f32
    %269 = vector.broadcast %cst_104 : f32 to vector<8x16xf32>
    %270 = arith.select %187, %268, %269 : vector<8x16xi1>, vector<8x16xf32>
    %271 = arith.addf %181, %270 : vector<8x16xf32>
    %272 = arith.extui %187 : vector<8x16xi1> to vector<8x16xi32>
    %273 = arith.sitofp %272 : vector<8x16xi32> to vector<8x16xf32>
    %274 = arith.addf %184, %273 : vector<8x16xf32>
    %275 = arith.extui %30 : vector<8x16xi1> to vector<8x16xi32>
    %276 = arith.sitofp %275 : vector<8x16xi32> to vector<8x16xf32>
    %cst_105 = arith.constant dense<0.000000e+00> : vector<16xf32>
    %277 = vector.multi_reduction <add>, %74, %cst_105 [0] : vector<8x16xf32> to vector<16xf32>
    %278 = vector.shape_cast %277 : vector<16xf32> to vector<1x16xf32>
    %cst_106 = arith.constant dense<0.000000e+00> : vector<16xf32>
    %279 = vector.multi_reduction <add>, %203, %cst_106 [0] : vector<8x16xf32> to vector<16xf32>
    %280 = vector.shape_cast %279 : vector<16xf32> to vector<1x16xf32>
    %cst_107 = arith.constant dense<0.000000e+00> : vector<16xf32>
    %281 = vector.multi_reduction <add>, %211, %cst_107 [0] : vector<8x16xf32> to vector<16xf32>
    %282 = vector.shape_cast %281 : vector<16xf32> to vector<1x16xf32>
    %cst_108 = arith.constant dense<0.000000e+00> : vector<16xf32>
    %283 = vector.multi_reduction <add>, %267, %cst_108 [0] : vector<8x16xf32> to vector<16xf32>
    %284 = vector.shape_cast %283 : vector<16xf32> to vector<1x16xf32>
    %cst_109 = arith.constant dense<0.000000e+00> : vector<16xf32>
    %285 = vector.multi_reduction <add>, %271, %cst_109 [0] : vector<8x16xf32> to vector<16xf32>
    %286 = vector.shape_cast %285 : vector<16xf32> to vector<1x16xf32>
    %cst_110 = arith.constant dense<0.000000e+00> : vector<16xf32>
    %287 = vector.multi_reduction <add>, %276, %cst_110 [0] : vector<8x16xf32> to vector<16xf32>
    %288 = vector.shape_cast %287 : vector<16xf32> to vector<1x16xf32>
    %cst_111 = arith.constant dense<0.000000e+00> : vector<16xf32>
    %289 = vector.multi_reduction <add>, %274, %cst_111 [0] : vector<8x16xf32> to vector<16xf32>
    %290 = vector.shape_cast %289 : vector<16xf32> to vector<1x16xf32>
    %cst_112 = arith.constant 0.000000e+00 : f32
    %291 = vector.broadcast %cst_112 : f32 to vector<1x16xf32>
    %292 = tpu.concatenate %278, %280, %282, %284, %286, %288, %290, %291 in 0 : vector<1x16xf32>, vector<1x16xf32>, vector<1x16xf32>, vector<1x16xf32>, vector<1x16xf32>, vector<1x16xf32>, vector<1x16xf32>, vector<1x16xf32> -> vector<8x16xf32>
    %c0_113 = arith.constant 0 : index
    %c0_114 = arith.constant 0 : index
    %293 = vector.load %arg3[%c0_113, %c0_114] : memref<8x16xf32, #tpu.memory_space<vmem>>, vector<8x16xf32>
    tpu.vector_store %arg3[%c0_113, %c0_114], %292 {strides = array<i32>} : memref<8x16xf32, #tpu.memory_space<vmem>>, vector<8x16xf32>,
    return
  }
  func.func @transform_0(%arg0: i32) -> (i32, i32, i32) {
    %c0_i32 = arith.constant 0 : i32
    %c0_i32_0 = arith.constant 0 : i32
    %c0_i32_1 = arith.constant 0 : i32
    return %c0_i32, %c0_i32_0, %arg0 : i32, i32, i32
  }
  func.func @transform_1(%arg0: i32) -> (i32, i32, i32) {
    %c0_i32 = arith.constant 0 : i32
    %c0_i32_0 = arith.constant 0 : i32
    %c0_i32_1 = arith.constant 0 : i32
    return %c0_i32, %c0_i32_0, %arg0 : i32, i32, i32
  }
  func.func @transform_2(%arg0: i32) -> (i32, i32) {
    %c0_i32 = arith.constant 0 : i32
    %c0_i32_0 = arith.constant 0 : i32
    return %c0_i32, %arg0 : i32, i32
  }
}

</mosaic_0001>

<bundles_post_ra>
// kernel: tpu_custom_call.1
= control target key start
LH: loop header
LB: loop body
LE: loop exit
PB: predicated region body
PF: predicated region fallthrough
CT: control target
= control target key end

     0   :  { %7 = vsyncpa [#allocation3], 0  ;;  %s722_s0 = inlined_call_operand.hbm [shape: f32[14,8,16], index: 0, kind: input, shape index: {}]   ;;  %s723_s1 = inlined_call_operand.hbm [shape: f32[9,8,16], index: 1, kind: input, shape index: {}]   ;;  %s724_s2 = inlined_call_operand.hbm [shape: f32[8,16], index: 2, kind: output, shape index: {}]  }
   0x1   :  { %8 = vsyncpa [#allocation6], 0 }
   0x2   :  { %9 = vsyncpa [#allocation4], 0  ;;  %s14_s11 = sshll.u32 %s722_s0, 4  ;;  %s465_s12 = smov [#allocation2]   ;;  %s15_s11 = int_to_ptr.hbm [resolvable:$true] %s14_s11 }
   0x3   :  { %s16_s13 = sshll.u32 %s465_s12, 4  ;;  %s27_s16 = sshll.u32 %s723_s1, 4  ;;  %s17_s13 = int_to_ptr.vmem [resolvable:$true] %s16_s13  ;;  %s28_s16 = int_to_ptr.hbm [resolvable:$true] %s27_s16 }
   0x4   :  { %s466_s17 = smov 128   ;;  %s467_s18 = smov 8  }
   0x5   :  { %22 = dma.hbm_to_vmem [thread:$0]  %s15_s11, 1792, %s17_s13, [#allocation3], %s466_s17, %s466_s17, %s467_s18  }
   0x6   :  { %s468_s19 = smov [#allocation5]  }
   0x7   :  { %s29_s20 = sshll.u32 %s468_s19, 4  ;;  %s30_s20 = int_to_ptr.vmem [resolvable:$true] %s29_s20 }
   0x8   :  { %35 = dma.hbm_to_vmem [thread:$0]  %s28_s16, 1152, %s30_s20, [#allocation6], %s466_s17, %s466_s17, %s467_s18  }
   0x9   :  { %459 = dma.done.wait [#allocation3], 1792  }
   0xa   :  { %460 = vsyncadd [#allocation3], 4294965504 }
   0xb   :  { %461 = dma.done.wait [#allocation6], 1152  }
   0xc   :  { %462 = vsyncadd [#allocation6], 4294966144  ;;  %v44_v0 = vlaneseq  ;;  %v469_v1 = vmov 8.0   ;;  %v84_v8 = vld [vmem:[#allocation2 + $0x50] sm:$0xff]  ;;  %v86_v10 = vld [vmem:[#allocation5 + $0x28] sm:$0xff]  ;;  %vm470_vm11 = vmmov 1  }
   0xd   :  { %377 = vrcp.f32 %v469_v1  ;;  %v91_v11 = vld [vmem:[#allocation2 + $0x58] sm:$0xff]  ;;  %v93_v12 = vld [vmem:[#allocation5 + $0x30] sm:$0xff]  ;;  %v500_v15 = vld [vmem:[#allocation5 + $0x18] sm:$0xff]  ;;  %v87_v17 = vsub.f32 %v84_v8, %v86_v10  ;;  %s472_s0 = smov [#allocation7]   ;;  %s355_s23 = sshll.u32 %s724_s2, 4  ;;  %s356_s23 = int_to_ptr.hbm [resolvable:$true] %s355_s23 }
   0xe   :  { %v45_v2 = vshrl.u32 %v44_v0, 7  ;;  %v494_v3 = vand.u32 127, %v44_v0  ;;  %v502_v16 = vld [vmem:[#allocation5 + $0x20] sm:$0xff]  ;;  %v94_v18 = vsub.f32 %v91_v11, %v93_v12  ;;  %v98_v19 = vld [vmem:[#allocation2 + $0x60] sm:$0xff]  ;;  %v100_v20 = vld [vmem:[#allocation5 + $0x38] sm:$0xff]  ;;  %v505_v21 = vmax.f32 %v500_v15, 0.0 }
   0xf   :  { %v508_v22 = vmax.f32 %v502_v16, 0.0  ;;  %v105_v24 = vld [vmem:[#allocation2 + $0x68] sm:$0xff]  ;;  %v107_v25 = vld [vmem:[#allocation5 + $0x40] sm:$0xff]  ;;  %v511_v27 = vld [vmem:[#allocation2] sm:$0xff]  ;;  %v101_v29 = vsub.f32 %v98_v19, %v100_v20  ;;  %v88_v31 = vmul.f32 %v87_v17, %v87_v17  ;;  %v183_v43 = vmul.f32 0.5, %v500_v15  ;;  %s353_s1 = sshll.u32 %s472_s0, 4  ;;  %s354_s1 = int_to_ptr.vmem [resolvable:$true] %s353_s1 }
  0x10   :  { %v51_v4 = vmul.u32 16, %v45_v2  ;;  %379 = vrsqrt.f32 %v505_v21  ;;  %v513_v28 = vld [vmem:[#allocation2 + $0x28] sm:$0xff]  ;;  %v95_v32 = vmul.f32 %v94_v18, %v94_v18  ;;  %v108_v33 = vsub.f32 %v105_v24, %v107_v25  ;;  %v516_v34 = vld [vmem:[#allocation2 + $0x18] sm:$0xff]  ;;  %v115_v38 = vld [vmem:[#allocation5 + $0x10] sm:$0xff] }
  0x11   :  { %381 = vrsqrt.f32 %v508_v22  ;;  %v520_v36 = vmax.f32 %v511_v27, %v513_v28  ;;  %v113_v37 = vld [vmem:[#allocation5 + $0x8] sm:$0xff]  ;;  %v522_v39 = vld [vmem:[#allocation2 + $0x20] sm:$0xff]  ;;  %v524_v40 = vmul.f32 %v101_v29, %v101_v29  ;;  %v122_v42 = vmul.f32 8.0, %v115_v38  ;;  %v154_v53 = vld [vmem:[#allocation2 + $0x8] sm:$0xff] }
  0x12   :  { %v497_v6 = vadd.s32 %v51_v4, %v494_v3  ;;  %v120_v41 = vmul.f32 8.0, %v113_v37  ;;  %v527_v47 = vadd.f32 %v95_v32, %v88_v31  ;;  %v179_v48 = vmul.f32 %v516_v34, %v516_v34  ;;  %v540_v59 = vld [vmem:[#allocation2 + $0x40] sm:$0xff]  ;;  %v551_v1 = vld [vmem:[#allocation5] sm:$0xff]  ;;  %v229_v11 = vld [vmem:[#allocation2 + $0x48] sm:$0xff] }
  0x13   :  { %v378_v5 = vpop.eup %377  ;;  %v531_v50 = vmul.f32 %v108_v33, %v108_v33  ;;  %v135_v52 = vand.u32 2147483648, %v505_v21  ;;  %v180_v54 = vmul.f32 %v522_v39, %v522_v39  ;;  %vm132_vm1 = vcmp.eq.f32.partialorder %v505_v21, inf  ;;  %v156_v8 = vld [vmem:[#allocation2 + $0x10] sm:$0xff] }
  0x14   :  { %v58_v7 = vmul.f32 8.0, %v378_v5  ;;  %v56_v13 = vcvt.s32.f32 %v497_v6  ;;  %vm62_vm0 = vweird.f32 %v378_v5  ;;  %v148_v58 = vand.u32 2147483648, %v508_v22  ;;  %v223_v19 = vld [vmem:[#allocation2 + $0x30] sm:$0xff] }
  0x15   :  { %vm134_vm2 = vcmp.eq.f32.partialorder %v505_v21, 0.0  ;;  %vm145_vm3 = vcmp.eq.f32.partialorder %v508_v22, inf  ;;  %v544_v61 = vadd.f32 %v183_v43, %v113_v37  ;;  %v546_v62 = vsub.f32 %v113_v37, %v183_v43 }
  0x16   :  { %v59_v9 = vsub.f32 1.0, %v58_v7  ;;  %v380_v44 = vpop.eup %379  ;;  %v193_v63 = vmul.f32 0.5, %v502_v16  ;;  %vm53_vm4 = vcmp.lt.s32.totalorder %v494_v3, 16  ;;  %vm54_vm5 = vcmp.lt.s32.totalorder %v497_v6, 128 }
  0x17   :  { %v382_v49 = vpop.eup %381  ;;  %v126_v51 = vmul.f32 %v380_v44, %v505_v21  ;;  %vm147_vm6 = vcmp.eq.f32.partialorder %v508_v22, 0.0  ;;  %vm79_vm7 = vcmp.ge.f32.partialorder %v511_v27, %v520_v36  ;;  %v558_v10 = vmul.f32 %v502_v16, %v500_v15  ;;  %vm593_vm10 = vmand %vm53_vm4, %vm54_vm5 }
  0x18   :  { %v60_v14 = vmul.f32 %v378_v5, %v59_v9  ;;  %v139_v57 = vmul.f32 %v382_v49, %v508_v22  ;;  %v191_v9 = vmul.f32 0.5, %v180_v54  ;;  %v562_v12 = vmul.f32 %v540_v59, %v540_v59  ;;  %vm81_vm12 = vmxor %vm79_vm7, %vm470_vm11 }
  0x19   :  { %v127_v60 = vmul.f32 %v380_v44, %v126_v51  ;;  %vm73_vm8 = vcmp.gt.f32.partialorder %v551_v1, 0.0  ;;  %v567_v24 = vsub.f32 %v115_v38, %v193_v63  ;;  %v202_v25 = vmul.f32 %v180_v54, %v179_v48 }
  0x1a   :  { %v61_v23 = vadd.f32 %v378_v5, %v60_v14  ;;  %v140_v2 = vmul.f32 %v382_v49, %v139_v57  ;;  %vm80_vm9 = vcmp.ge.f32.partialorder %v513_v28, %v520_v36  ;;  %v571_v29 = vmul.f32 %v229_v11, %v229_v11  ;;  %vm613_vm13 = vmand %vm73_vm8, %vm593_vm10 }
  0x1b   :  { %v128_v7 = vmul.f32 0.5, %v127_v60  ;;  %v250_v43 = vmul.f32 0.5, %v562_v12  ;;  %vm82_vm14 = vmand %vm80_vm9, %vm81_vm12  ;;  %vm283_vm5 = vcmask 130048   ;;  %vm337_vm8 = vcmask 1042432  }
  0x1c   :  { %v63_v26 = vsel %vm62_vm0, %v378_v5, %v61_v23  ;;  %v181_v5 = vmul.f32 0.5, %v179_v48  ;;  %v141_v17 = vmul.f32 0.5, %v140_v2  ;;  %v565_v23 = vadd.f32 %v193_v63, %v115_v38  ;;  %vm630_vm15 = vmand %vm613_vm13, %vm79_vm7 }
  0x1d   :  { %v64_v30 = vmul.f32 %v63_v26, %v56_v13  ;;  %v129_v20 = vsub.f32 1.5, %v128_v7  ;;  %vm637_vm0 = vmand %vm613_vm13, %vm82_vm14  ;;  %vm335_vm7 = vcmask 1041408   ;;  %vm339_vm9 = vcmask 1043456  }
  0x1e   :  { %v142_v16 = vsub.f32 1.5, %v141_v17  ;;  %vm345_vm12 = vcmask 1046528  }
  0x1f   :  { %v65_v35 = vfloor.f32 %v64_v30  ;;  %v130_v30 = vmul.f32 %v380_v44, %v129_v20  ;;  %v225_v44 = vld [vmem:[#allocation2 + $0x38] sm:$0xff] }
  0x21   :  { %v66_v45 = vmul.f32 8.0, %v65_v35  ;;  %v68_v46 = vmul.f32 %v65_v35, %v63_v26  ;;  %v131_v38 = vmul.f32 %v130_v30, %v505_v21 }
  0x23   :  { %v67_v55 = vsub.f32 %v56_v13, %v66_v45  ;;  %v69_v56 = vfloor.f32 %v68_v46 }
  0x25   :  { %v70_v0 = vmul.f32 8.0, %v69_v56  ;;  %v175_v4 = vadd.f32 %v154_v53, %v67_v55  ;;  %v121_v14 = vsub.f32 %v120_v41, %v67_v55  ;;  %v244_v33 = vadd.f32 %v223_v19, %v67_v55 }
  0x27   :  { %v71_v13 = vsub.f32 %v65_v35, %v70_v0  ;;  %v176_v18 = vmul.f32 0.125, %v175_v4  ;;  %v143_v35 = vmul.f32 %v382_v49, %v142_v16  ;;  %v161_v37 = vsub.f32 %v154_v53, %v121_v14 }
  0x28   :  { %v230_v56 = vsub.f32 %v223_v19, %v121_v14  ;;  %v133_v49 = vsel %vm132_vm1, %v505_v21, %v131_v38  ;;  %v245_v57 = vmul.f32 0.125, %v244_v33  ;;  %vm646_vm1 = vmxor %vm630_vm15, %vm470_vm11 }
  0x29   :  { %v123_v15 = vsub.f32 %v122_v42, %v71_v13  ;;  %v177_v26 = vadd.f32 %v156_v8, %v71_v13  ;;  %v182_v31 = vadd.f32 %v181_v5, %v176_v18  ;;  %v186_v32 = vsub.f32 %v176_v18, %v181_v5 }
  0x2a   :  { %v144_v48 = vmul.f32 %v143_v35, %v508_v22  ;;  %v136_v60 = vsel %vm134_vm2, %v135_v52, %v133_v49  ;;  %v163_v0 = vmul.f32 %v161_v37, %v161_v37  ;;  %v246_v17 = vadd.f32 %v225_v44, %v71_v13  ;;  %vm658_vm2 = vmxor %vm637_vm0, %vm470_vm11 }
  0x2b   :  { %v178_v41 = vmul.f32 0.125, %v177_v26  ;;  %v162_v45 = vsub.f32 %v156_v8, %v123_v15  ;;  %v185_v46 = vmin.f32 %v182_v31, %v544_v61  ;;  %v188_v42 = vmax.f32 %v186_v32, %v546_v62  ;;  %vm221_vm4 = vmand %vm593_vm10, %vm658_vm2 }
  0x2c   :  { %v231_v55 = vsub.f32 %v225_v44, %v123_v15  ;;  %v146_v63 = vsel %vm145_vm3, %v508_v22, %v144_v48  ;;  %v168_v5 = vsub.f32 %v516_v34, %v136_v60  ;;  %v232_v8 = vmul.f32 %v230_v56, %v230_v56  ;;  %vm152_vm3 = vmand %vm593_vm10, %vm646_vm1 }
  0x2d   :  { %v192_v51 = vadd.f32 %v191_v9, %v178_v41  ;;  %v196_v54 = vsub.f32 %v178_v41, %v191_v9  ;;  %v189_v53 = vsub.f32 %v185_v46, %v188_v42  ;;  %v149_v21 = vsel %vm147_vm6, %v148_v58, %v146_v63 }
  0x2e   :  { %v164_v52 = vmul.f32 %v162_v45, %v162_v45  ;;  %v169_v3 = vsub.f32 %v522_v39, %v149_v21  ;;  %v237_v9 = vsub.f32 %v540_v59, %v136_v60  ;;  %v233_v22 = vmul.f32 %v231_v55, %v231_v55 }
  0x2f   :  { %v195_v2 = vmin.f32 %v192_v51, %v565_v23  ;;  %v198_v7 = vmax.f32 %v196_v54, %v567_v24  ;;  %v190_v6 = vmax.f32 %v189_v53, 0.0  ;;  %v238_v58 = vsub.f32 %v229_v11, %v149_v21 }
  0x30   :  { %v103_v18 = vadd.f32 %v524_v40, %v527_v47  ;;  %v204_v39 = vadd.f32 %v558_v10, %v202_v25  ;;  %v251_v19 = vadd.f32 %v250_v43, %v245_v57  ;;  %v257_v59 = vmul.f32 0.5, %v571_v29 }
  0x31   :  { %v199_v14 = vsub.f32 %v195_v2, %v198_v7  ;;  %v170_v11 = vmul.f32 %v168_v5, %v168_v5  ;;  %v247_v20 = vmul.f32 0.125, %v246_v17  ;;  %v253_v1 = vsub.f32 %v245_v57, %v250_v43 }
  0x32   :  { %v171_v15 = vmul.f32 %v169_v3, %v169_v3  ;;  %v239_v16 = vmul.f32 %v237_v9, %v237_v9  ;;  %v240_v26 = vmul.f32 %v238_v58, %v238_v58  ;;  %v252_v30 = vmin.f32 %v251_v19, %v544_v61 }
  0x33   :  { %v200_v13 = vmax.f32 %v199_v14, 0.0  ;;  %v165_v47 = vadd.f32 %v164_v52, %v163_v0  ;;  %v234_v31 = vadd.f32 %v233_v22, %v232_v8  ;;  %v254_v32 = vmax.f32 %v253_v1, %v546_v62 }
  0x34   :  { %v258_v61 = vadd.f32 %v257_v59, %v247_v20  ;;  %v260_v35 = vsub.f32 %v247_v20, %v257_v59  ;;  %v265_v41 = vmul.f32 %v571_v29, %v562_v12  ;;  %v172_v62 = vadd.f32 %v171_v15, %v170_v11 }
  0x35   :  { %v201_v25 = vmul.f32 %v200_v13, %v190_v6  ;;  %v255_v37 = vsub.f32 %v252_v30, %v254_v32  ;;  %v241_v38 = vadd.f32 %v240_v26, %v239_v16  ;;  %v110_v42 = vadd.f32 %v531_v50, %v103_v18 }
  0x36   :  { %v259_v45 = vmin.f32 %v258_v61, %v565_v23  ;;  %v261_v46 = vmax.f32 %v260_v35, %v567_v24  ;;  %v166_v48 = vsel %vm630_vm15, %v165_v47, 0.0  ;;  %v235_v29 = vsel %vm637_vm0, %v234_v31, 0.0 }
  0x37   :  { %v205_v36 = vsub.f32 %v204_v39, %v201_v25  ;;  %v256_v54 = vmax.f32 %v255_v37, 0.0  ;;  %v213_v50 = vmul.f32 %v511_v27, %v511_v27  ;;  %v266_v24 = vadd.f32 %v265_v41, %v558_v10 }
  0x38   :  { %v262_v23 = vsub.f32 %v259_v45, %v261_v46  ;;  %v275_v44 = vmul.f32 %v513_v28, %v513_v28  ;;  %v173_v56 = vsel %vm630_vm15, %v172_v62, 0.0  ;;  %v236_v49 = vadd.f32 %v235_v29, %v166_v48 }
  0x39   :  { %v206_v51 = vmax.f32 %v205_v36, 1e-10  ;;  %v242_v53 = vsel %vm637_vm0, %v241_v38, 0.0  ;;  %v111_v57 = vsel %vm613_vm13, %v110_v42, 0.0  ;;  %v214_v60 = vsel %vm152_vm3, %v213_v50, 0.0 }
  0x3a   :  { %v263_v55 = vmax.f32 %v262_v23, 0.0  ;;  %v243_v63 = vadd.f32 %v242_v53, %v173_v56  ;;  %v276_v0 = vsel %vm221_vm4, %v275_v44, 0.0  ;;  %v284_v21 = vsel %vm283_vm5, %v111_v57, 0.0 }
  0x3b   :  { %383 = vrcp.f32 %v206_v51  ;;  %v291_v52 = vsel %vm283_vm5, %v236_v49, 0.0  ;;  %v471_v7 = vmov 0.0   ;;  %v277_v8 = vadd.f32 %v276_v0, %v214_v60 }
  0x3c   :  { %v264_v10 = vmul.f32 %v263_v55, %v256_v54  ;;  %v366_v3 = vsel %vm152_vm3, 1.0, %v471_v7  ;;  %v367_v9 = vsel %vm221_vm4, 1.0, %v471_v7  ;;  %v285_v22 = vrot.slane %v284_v21, 4 }
  0x3d   :  { %v292_v58 = vrot.slane %v291_v52, 4  ;;  %v298_v17 = vsel %vm283_vm5, %v243_v63, 0.0  ;;  %v368_v18 = vsel %vm613_vm13, 1.0, %v471_v7  ;;  %v280_v39 = vadd.f32 %v367_v9, %v366_v3 }
  0x3e   :  { %v267_v2 = vsub.f32 %v266_v24, %v264_v10  ;;  %v299_v19 = vrot.slane %v298_v17, 4  ;;  %v312_v59 = vsel %vm283_vm5, %v277_v8, 0.0  ;;  %v286_v4 = vadd.f32 %v285_v22, %v284_v21 }
  0x3f   :  { %v293_v13 = vadd.f32 %v292_v58, %v291_v52  ;;  %v319_v20 = vsel %vm283_vm5, %v368_v18, 0.0  ;;  %v326_v1 = vsel %vm283_vm5, %v280_v39, 0.0  ;;  %v313_v26 = vrot.slane %v312_v59, 4 }
  0x40   :  { %v268_v6 = vmax.f32 %v267_v2, 1e-10  ;;  %v300_v16 = vadd.f32 %v299_v19, %v298_v17  ;;  %v320_v30 = vrot.slane %v319_v20, 4  ;;  %v287_v34 = vrot.slane %v286_v4, 2 }
  0x41   :  { %v384_v5 = vpop.eup %383  ;;  %v294_v31 = vrot.slane %v293_v13, 2  ;;  %v327_v32 = vrot.slane %v326_v1, 4  ;;  %v314_v36 = vadd.f32 %v313_v26, %v312_v59  ;;  %vm333_vm6 = vcmask 1040384  }
  0x42   :  { %v208_v14 = vmul.f32 %v384_v5, %v201_v25  ;;  %385 = vrcp.f32 %v268_v6  ;;  %v301_v35 = vrot.slane %v300_v16, 2  ;;  %v288_v43 = vadd.f32 %v287_v34, %v286_v4 }
  0x43   :  { %v295_v62 = vadd.f32 %v294_v31, %v293_v13  ;;  %v328_v38 = vadd.f32 %v327_v32, %v326_v1  ;;  %v315_v48 = vrot.slane %v314_v36, 2  ;;  %vm341_vm10 = vcmask 1044480  }
  0x44   :  { %v209_v11 = vsub.f32 %v511_v27, %v208_v14  ;;  %v321_v27 = vadd.f32 %v320_v30, %v319_v20  ;;  %v302_v42 = vadd.f32 %v301_v35, %v300_v16  ;;  %v289_v51 = vrot.slane %v288_v43, 1 }
  0x45   :  { %v296_v12 = vrot.slane %v295_v62, 1  ;;  %v329_v54 = vrot.slane %v328_v38, 2  ;;  %v316_v40 = vadd.f32 %v315_v48, %v314_v36  ;;  %vm343_vm11 = vcmask 1045504  }
  0x46   :  { %v210_v47 = vmul.f32 %v209_v11, %v209_v11  ;;  %v322_v29 = vrot.slane %v321_v27, 2  ;;  %v303_v50 = vrot.slane %v302_v42, 1  ;;  %v290_v24 = vadd.f32 %v289_v51, %v288_v43 }
  0x47   :  { %v297_v44 = vadd.f32 %v296_v12, %v295_v62  ;;  %v330_v53 = vadd.f32 %v329_v54, %v328_v38  ;;  %v317_v57 = vrot.slane %v316_v40, 1 }
  0x48   :  { %v386_v15 = vpop.eup %385  ;;  %v211_v37 = vsel %vm630_vm15, %v210_v47, 0.0  ;;  %v323_v49 = vadd.f32 %v322_v29, %v321_v27  ;;  %v304_v55 = vadd.f32 %v303_v50, %v302_v42 }
  0x49   :  { %v270_v25 = vmul.f32 %v386_v15, %v264_v10  ;;  %v334_v63 = vsel %vm333_vm6, %v290_v24, %v297_v44  ;;  %v331_v0 = vrot.slane %v330_v53, 1  ;;  %v318_v21 = vadd.f32 %v317_v57, %v316_v40 }
  0x4a   :  { %v324_v60 = vrot.slane %v323_v49, 1  ;;  %v336_v52 = vsel %vm335_vm7, %v334_v63, %v304_v55 }
  0x4b   :  { %v271_v61 = vsub.f32 %v513_v28, %v270_v25  ;;  %v332_v3 = vadd.f32 %v331_v0, %v330_v53 }
  0x4c   :  { %v325_v7 = vadd.f32 %v324_v60, %v323_v49 }
  0x4d   :  { %v272_v41 = vmul.f32 %v271_v61, %v271_v61 }
  0x4f   :  { %v273_v45 = vsel %vm637_vm0, %v272_v41, 0.0 }
  0x50   :  { %v274_v46 = vadd.f32 %v273_v45, %v211_v37 }
  0x52   :  { %v305_v28 = vsel %vm283_vm5, %v274_v46, 0.0 }
  0x53   :  { %v306_v23 = vrot.slane %v305_v28, 4 }
  0x55   :  { %v307_v56 = vadd.f32 %v306_v23, %v305_v28 }
  0x57   :  { %v308_v33 = vrot.slane %v307_v56, 2 }
  0x59   :  { %v309_v10 = vadd.f32 %v308_v33, %v307_v56 }
  0x5b   :  { %v310_v2 = vrot.slane %v309_v10, 1 }
  0x5d   :  { %v311_v5 = vadd.f32 %v310_v2, %v309_v10 }
  0x5f   :  { %v338_v6 = vsel %vm337_vm8, %v336_v52, %v311_v5 }
  0x60   :  { %v340_v8 = vsel %vm339_vm9, %v338_v6, %v318_v21 }
  0x61   :  { %v342_v9 = vsel %vm341_vm10, %v340_v8, %v325_v7 }
  0x62   :  { %v344_v14 = vsel %vm343_vm11, %v342_v9, %v332_v3 }
  0x63   :  { %v346_v22 = vsel %vm345_vm12, %v344_v14, 0.0 }
  0x64   :  { %347 = vst.msk [vmem:[#allocation7] sm:$0xff] %vm283_vm5, %v346_v22 }
  0x65   :  { %358 = dma.vmem_to_hbm [thread:$0]  %s354_s1, 128, %s356_s23, [#allocation4]  }
  0x66   :  { %463 = dma.done.wait [#allocation4], 128  }
  0x67   :  { %464 = vsyncadd [#allocation4], 4294967168 }
  0x68   :  { %363 = vsyncpa [#allocation3], 1 }
  0x69   :  { %364 = vsyncpa [#allocation6], 1 }
  0x6a   :  { %365 = vsyncpa [#allocation4], 1 }

</bundles_post_ra>
